<compile_context>
chip_gen: v7x
topology: tpu7x:2x2x1
jax: 0.10.0
libtpu: 0.0.40
codegen_flags: <defaults>
</compile_context>

<pallas_src>
import jax
import jax.numpy as jnp
from jax.experimental import pallas as pl
from jax.experimental.pallas import tpu as pltpu


LANE = 128          # lane width
SUBLANE = 8         # sublane granule
TB_LANE_MAX = 4096  # max batch lanes per grid step (transposed path)
TB_ROW_MAX = 1024   # max batch rows per grid step (standard path)
_VMEM_BUDGET = 8 * 1024 * 1024   # conservative: fits every generation's default


def _round_up(x, m):
    return ((x + m - 1) // m) * m


def _pad2(a, rows, cols):
    out = jnp.zeros((rows, cols), a.dtype)
    return out.at[: a.shape[0], : a.shape[1]].set(a)


# --------------------------------------------------------------------------
# Kernels
# --------------------------------------------------------------------------
def _mlp_kernel_t(x_ref, w1_ref, b1_ref, w2_ref, b2_ref, w3_ref, b3_ref, o_ref):
    """Transposed (batch-on-lanes) fused MLP for d_in == 1, out == 1.

    x_ref: (1, TB)        w1_ref: (H1p, 1)   b1_ref: (H1p, 1)
    w2_ref: (H2p, H1p)    b2_ref: (H2p, 1)
    w3_ref: (H2p, 1)      b3_ref: (1, 1)     o_ref: (1, TB)
    """
    x = x_ref[...]                                              # (1, TB) lane-dense

    # Layer 1: outer product on the VPU (d_in == 1) -> (H1p, TB).
    h1 = jnp.maximum(w1_ref[...] * x + b1_ref[...], 0.0)

    # Layer 2: MXU matmul with lane-dense N = TB -> (H2p, TB).
    h2 = jnp.dot(w2_ref[...], h1, preferred_element_type=jnp.float32)
    h2 = jnp.maximum(h2 + b2_ref[...], 0.0)

    # Layer 3 (out == 1): VPU multiply + sublane reduce instead of an M=1 matmul.
    o = jnp.sum(h2 * w3_ref[...], axis=0, keepdims=True)        # (1, TB)
    o_ref[...] = (o + b3_ref[...]).astype(o_ref.dtype)


def _mlp_kernel_std(x_ref, w1_ref, b1_ref, w2_ref, b2_ref, w3_ref, b3_ref, o_ref):
    """General (batch-on-sublanes) fused MLP fallback."""
    x = x_ref[...]                      # (TB, d_in), native feature width
    w1 = w1_ref[...]                    # (d_in, H1p)
    d_in = x.shape[-1]

    if d_in <= 8:
        # Tiny-K layer 1 on the VPU: a K<8 MXU matmul wastes >=15/16 of a push.
        h1 = x[:, 0:1] * w1[0:1, :]
        for k in range(1, d_in):
            h1 = h1 + x[:, k:k + 1] * w1[k:k + 1, :]
    else:
        h1 = jnp.dot(x, w1, preferred_element_type=jnp.float32)
    h1 = jnp.maximum(h1 + b1_ref[...], 0.0)

    h2 = jnp.dot(h1, w2_ref[...], preferred_element_type=jnp.float32)
    h2 = jnp.maximum(h2 + b2_ref[...], 0.0)

    o = jnp.dot(h2, w3_ref[...], preferred_element_type=jnp.float32)
    o_ref[...] = (o + b3_ref[...]).astype(o_ref.dtype)


# --------------------------------------------------------------------------
# Parameter preparation (done once, outside the jit'd forward)
# --------------------------------------------------------------------------
def prepare_params(params):
    """Pad hidden dims (inertly, with zeros) and pick the kernel layout."""
    w1, b1 = params["w1"], params["b1"]   # (d_in, H1), (H1,)
    w2, b2 = params["w2"], params["b2"]   # (H1, H2),   (H2,)
    w3, b3 = params["w3"], params["b3"]   # (H2, out),  (out,)
    d_in, h1 = w1.shape
    h2 = w2.shape[1]
    out = w3.shape[1]

    if d_in == 1 and out == 1:
        # Batch-on-lanes (transposed) layout.  H1 padded to a full lane width
        # (MXU contraction dim); H2 only needs sublane (8) granularity.
        h1p = _round_up(h1, LANE)
        h2p = _round_up(h2, SUBLANE)
        return {
            "w1t": _pad2(w1.T, h1p, 1),          # (H1p, 1)
            "b1t": _pad2(b1[:, None], h1p, 1),   # (H1p, 1)
            "w2t": _pad2(w2.T, h2p, h1p),        # (H2p, H1p)
            "b2t": _pad2(b2[:, None], h2p, 1),   # (H2p, 1)
            "w3t": _pad2(w3, h2p, 1),            # (H2p, 1)
            "b3t": b3[None, :],                  # (1, 1)
        }

    h1p = _round_up(h1, LANE)
    h2p = _round_up(h2, LANE)
    return {
        "w1": _pad2(w1, d_in, h1p),              # (d_in, H1p)
        "b1": _pad2(b1[None, :], 1, h1p),        # (1, H1p)
        "w2": _pad2(w2, h1p, h2p),               # (H1p, H2p)
        "b2": _pad2(b2[None, :], 1, h2p),        # (1, H2p)
        "w3": _pad2(w3, h2p, out),               # (H2p, out)
        "b3": b3[None, :],                       # (1, out)
    }


# --------------------------------------------------------------------------
# Forward passes
# --------------------------------------------------------------------------
def _forward_transposed(x, p):
    n = x.shape[0]
    x_t = x.reshape(1, n)                      # batch on lanes (metadata reshape)
    h1p = p["w1t"].shape[0]
    h2p = p["w2t"].shape[0]

    # VMEM-budget-driven lane tile: double-buffered (1, TB) I/O blocks plus up
    # to ~3 live (H, TB) f32 temporaries per layer (conservative estimate).
    per_col = 4 * (4 + 3 * (h1p + h2p))
    cap = (_VMEM_BUDGET // per_col) // LANE * LANE
    cap = max(LANE, min(TB_LANE_MAX, cap))

    if n <= cap:
        tb, grid = n, (1,)                     # single step, no tail, no padding
    else:
        tb, grid = cap, (pl.cdiv(n, cap),)     # ragged tail = Pallas partial block

    tile = lambda i: (0, i)
    full = lambda i: (0, 0)

    out_t = pl.pallas_call(
        _mlp_kernel_t,
        out_shape=jax.ShapeDtypeStruct((1, n), jnp.float32),
        grid_spec=pltpu.PrefetchScalarGridSpec(
            num_scalar_prefetch=0,
            grid=grid,
            in_specs=[
                pl.BlockSpec((1, tb), tile),            # x, lane-dense
                pl.BlockSpec(p["w1t"].shape, full),     # (H1p, 1)
                pl.BlockSpec(p["b1t"].shape, full),     # (H1p, 1)
                pl.BlockSpec(p["w2t"].shape, full),     # (H2p, H1p)
                pl.BlockSpec(p["b2t"].shape, full),     # (H2p, 1)
                pl.BlockSpec(p["w3t"].shape, full),     # (H2p, 1)
                pl.BlockSpec(p["b3t"].shape, full),     # (1, 1)
            ],
            out_specs=pl.BlockSpec((1, tb), tile),      # output, lane-dense
        ),
        compiler_params=pltpu.CompilerParams(
            dimension_semantics=("parallel",),
        ),
    )(x_t, p["w1t"], p["b1t"], p["w2t"], p["b2t"], p["w3t"], p["b3t"])

    return out_t.reshape(n, 1)                 # metadata reshape back to (N, 1)


def _forward_standard(x, p):
    n, d_in = x.shape
    out = p["w3"].shape[1]
    h1p = p["w1"].shape[1]
    h2p = p["w2"].shape[1]

    # VMEM-budget-driven row tile (double-buffered I/O + two hidden blocks).
    per_row = 4 * (4 * d_in + 4 * out + 2 * (h1p + h2p))
    cap = (_VMEM_BUDGET // per_row) // SUBLANE * SUBLANE
    cap = max(SUBLANE, min(TB_ROW_MAX, cap))

    if n <= cap:
        tb, grid = n, (1,)                     # single step, block == full array
    else:
        tb, grid = cap, (pl.cdiv(n, cap),)     # ragged tail = Pallas partial block

    tile = lambda i: (i, 0)
    full = lambda i: (0, 0)

    return pl.pallas_call(
        _mlp_kernel_std,
        out_shape=jax.ShapeDtypeStruct((n, out), jnp.float32),
        grid_spec=pltpu.PrefetchScalarGridSpec(
            num_scalar_prefetch=0,
            grid=grid,
            in_specs=[
                pl.BlockSpec((tb, d_in), tile),         # x, native feature width
                pl.BlockSpec(p["w1"].shape, full),
                pl.BlockSpec(p["b1"].shape, full),
                pl.BlockSpec(p["w2"].shape, full),
                pl.BlockSpec(p["b2"].shape, full),
                pl.BlockSpec(p["w3"].shape, full),
                pl.BlockSpec(p["b3"].shape, full),
            ],
            out_specs=pl.BlockSpec((tb, out), tile),    # output, native width
        ),
        compiler_params=pltpu.CompilerParams(
            dimension_semantics=("parallel",),
        ),
    )(x, p["w1"], p["b1"], p["w2"], p["b2"], p["w3"], p["b3"])


@jax.jit
def net_forward(x, padded_params):
    """x: (N, in_feature) float32. padded_params: output of prepare_params."""
    if "w1t" in padded_params:                 # static (pytree structure)
        return _forward_transposed(x, padded_params)
    return _forward_standard(x, padded_params)


# --------------------------------------------------------------------------
# Init + reference
# --------------------------------------------------------------------------
def init_params(key, in_feature, out_features):
    """Deterministic init mimicking torch.nn.Linear defaults:
    W, b ~ U(-1/sqrt(fan_in), 1/sqrt(fan_in)). Weights stored as (in, out)."""
    dims = [(in_feature, 100), (100, 20), (20, out_features)]
    params = {}
    for idx, (fan_in, fan_out) in enumerate(dims, start=1):
        key, kw, kb = jax.random.split(key, 3)
        bound = 1.0 / jnp.sqrt(jnp.float32(fan_in))
        params[f"w{idx}"] = jax.random.uniform(
            kw, (fan_in, fan_out), jnp.float32, -bound, bound)
        params[f"b{idx}"] = jax.random.uniform(
            kb, (fan_out,), jnp.float32, -bound, bound)
    return params


def _reference_forward(x, params):
    h1 = jnp.maximum(x @ params["w1"] + params["b1"], 0.0)
    h2 = jnp.maximum(h1 @ params["w2"] + params["b2"], 0.0)
    return h2 @ params["w3"] + params["b3"]


if __name__ == "__main__":
    in_feature, out_features = 1, 1
    n = 1000  # same as the reference script's linspace(-1, 1, 1000)

    key = jax.random.PRNGKey(0)
    k_params, _ = jax.random.split(key)
    params = init_params(k_params, in_feature, out_features)
    padded = prepare_params(params)   # padded / transposed once, outside jit

    # Same flavor of input as the reference script: column vector in [-1, 1].
    x = jnp.linspace(-1.0, 1.0, n, dtype=jnp.float32)[:, None]  # (N, 1)

    y = net_forward(x, padded)
    y = jax.block_until_ready(y)

    y_ref = _reference_forward(x, params)
    assert y.shape == (n, out_features)
    assert jnp.allclose(y, y_ref, atol=2e-5, rtol=2e-5)

    print("KERNEL_OK")
</pallas_src>

<mosaic_0001>
module attributes {stable_mosaic.version = 11 : i64} {
  func.func @_mlp_kernel_t(%arg0: i32, %arg1: memref<1x1000xf32, #tpu.memory_space<vmem>>, %arg2: memref<128x1xf32, #tpu.memory_space<vmem>>, %arg3: memref<128x1xf32, #tpu.memory_space<vmem>>, %arg4: memref<24x128xf32, #tpu.memory_space<vmem>>, %arg5: memref<24x1xf32, #tpu.memory_space<vmem>>, %arg6: memref<24x1xf32, #tpu.memory_space<vmem>>, %arg7: memref<1x1xf32, #tpu.memory_space<vmem>>, %arg8: memref<1x1000xf32, #tpu.memory_space<vmem>>) attributes {dimension_semantics = [#tpu.dimension_semantics<parallel>], iteration_bounds = array<i64: 1>, scalar_prefetch = 0 : i64, scratch_operands = 0 : i64, tpu.core_type = #tpu.core_type<tc>, window_params = [{transform_indices = @transform_0, window_bounds = array<i64: 1, 1000>}, {pipeline_mode = #tpu.pipeline_mode<synchronous>, transform_indices = @transform_1, window_bounds = array<i64: 128, 1>}, {pipeline_mode = #tpu.pipeline_mode<synchronous>, transform_indices = @transform_2, window_bounds = array<i64: 128, 1>}, {pipeline_mode = #tpu.pipeline_mode<synchronous>, transform_indices = @transform_3, window_bounds = array<i64: 24, 128>}, {pipeline_mode = #tpu.pipeline_mode<synchronous>, transform_indices = @transform_4, window_bounds = array<i64: 24, 1>}, {pipeline_mode = #tpu.pipeline_mode<synchronous>, transform_indices = @transform_5, window_bounds = array<i64: 24, 1>}, {pipeline_mode = #tpu.pipeline_mode<synchronous>, transform_indices = @transform_6, window_bounds = array<i64: 1, 1>}, {transform_indices = @transform_7, window_bounds = array<i64: 1, 1000>}]} {
    %c0 = arith.constant 0 : index
    %c0_0 = arith.constant 0 : index
    %0 = vector.load %arg1[%c0, %c0_0] : memref<1x1000xf32, #tpu.memory_space<vmem>>, vector<1x1000xf32>
    %c0_1 = arith.constant 0 : index
    %c0_2 = arith.constant 0 : index
    %1 = vector.load %arg2[%c0_1, %c0_2] : memref<128x1xf32, #tpu.memory_space<vmem>>, vector<128x1xf32>
    %2 = vector.broadcast %1 : vector<128x1xf32> to vector<128x1000xf32>
    %3 = vector.broadcast %0 : vector<1x1000xf32> to vector<128x1000xf32>
    %4 = arith.mulf %2, %3 : vector<128x1000xf32>
    %c0_3 = arith.constant 0 : index
    %c0_4 = arith.constant 0 : index
    %5 = vector.load %arg3[%c0_3, %c0_4] : memref<128x1xf32, #tpu.memory_space<vmem>>, vector<128x1xf32>
    %6 = vector.broadcast %5 : vector<128x1xf32> to vector<128x1000xf32>
    %7 = arith.addf %4, %6 : vector<128x1000xf32>
    %cst = arith.constant 0.000000e+00 : f32
    %8 = vector.broadcast %cst : f32 to vector<128x1000xf32>
    %9 = arith.maximumf %7, %8 : vector<128x1000xf32>
    %c0_5 = arith.constant 0 : index
    %c0_6 = arith.constant 0 : index
    %10 = vector.load %arg4[%c0_5, %c0_6] : memref<24x128xf32, #tpu.memory_space<vmem>>, vector<24x128xf32>
    %cst_7 = arith.constant dense<0.000000e+00> : vector<24x1000xf32>
    %11 = tpu.matmul %10, %9, %cst_7 {dimension_numbers = #tpu.dot_dimension_numbers<[1], [0], [0], [1], [0, 0, 1, 1], [], []>} : vector<24x128xf32>, vector<128x1000xf32>, vector<24x1000xf32> -> vector<24x1000xf32>
    %c0_8 = arith.constant 0 : index
    %c0_9 = arith.constant 0 : index
    %12 = vector.load %arg5[%c0_8, %c0_9] : memref<24x1xf32, #tpu.memory_space<vmem>>, vector<24x1xf32>
    %13 = vector.broadcast %12 : vector<24x1xf32> to vector<24x1000xf32>
    %14 = arith.addf %11, %13 : vector<24x1000xf32>
    %cst_10 = arith.constant 0.000000e+00 : f32
    %15 = vector.broadcast %cst_10 : f32 to vector<24x1000xf32>
    %16 = arith.maximumf %14, %15 : vector<24x1000xf32>
    %c0_11 = arith.constant 0 : index
    %c0_12 = arith.constant 0 : index
    %17 = vector.load %arg6[%c0_11, %c0_12] : memref<24x1xf32, #tpu.memory_space<vmem>>, vector<24x1xf32>
    %18 = vector.broadcast %17 : vector<24x1xf32> to vector<24x1000xf32>
    %19 = arith.mulf %16, %18 : vector<24x1000xf32>
    %cst_13 = arith.constant dense<0.000000e+00> : vector<1000xf32>
    %20 = vector.multi_reduction <add>, %19, %cst_13 [0] : vector<24x1000xf32> to vector<1000xf32>
    %21 = vector.shape_cast %20 : vector<1000xf32> to vector<1x1000xf32>
    %c0_14 = arith.constant 0 : index
    %c0_15 = arith.constant 0 : index
    %22 = vector.load %arg7[%c0_14, %c0_15] : memref<1x1xf32, #tpu.memory_space<vmem>>, vector<1x1xf32>
    %23 = vector.broadcast %22 : vector<1x1xf32> to vector<1x1000xf32>
    %24 = arith.addf %21, %23 : vector<1x1000xf32>
    %c0_16 = arith.constant 0 : index
    %c0_17 = arith.constant 0 : index
    %25 = vector.load %arg8[%c0_16, %c0_17] : memref<1x1000xf32, #tpu.memory_space<vmem>>, vector<1x1000xf32>
    tpu.vector_store %arg8[%c0_16, %c0_17], %24 {strides = array<i32>} : memref<1x1000xf32, #tpu.memory_space<vmem>>, vector<1x1000xf32>,
    return
  }
  func.func @transform_0(%arg0: i32) -> (i32, i32) {
    %c0_i32 = arith.constant 0 : i32
    %c0_i32_0 = arith.constant 0 : i32
    return %c0_i32, %arg0 : i32, i32
  }
  func.func @transform_1(%arg0: i32) -> (i32, i32) {
    %c0_i32 = arith.constant 0 : i32
    %c0_i32_0 = arith.constant 0 : i32
    %c0_i32_1 = arith.constant 0 : i32
    return %c0_i32, %c0_i32_0 : i32, i32
  }
  func.func @transform_2(%arg0: i32) -> (i32, i32) {
    %c0_i32 = arith.constant 0 : i32
    %c0_i32_0 = arith.constant 0 : i32
    %c0_i32_1 = arith.constant 0 : i32
    return %c0_i32, %c0_i32_0 : i32, i32
  }
  func.func @transform_3(%arg0: i32) -> (i32, i32) {
    %c0_i32 = arith.constant 0 : i32
    %c0_i32_0 = arith.constant 0 : i32
    %c0_i32_1 = arith.constant 0 : i32
    return %c0_i32, %c0_i32_0 : i32, i32
  }
  func.func @transform_4(%arg0: i32) -> (i32, i32) {
    %c0_i32 = arith.constant 0 : i32
    %c0_i32_0 = arith.constant 0 : i32
    %c0_i32_1 = arith.constant 0 : i32
    return %c0_i32, %c0_i32_0 : i32, i32
  }
  func.func @transform_5(%arg0: i32) -> (i32, i32) {
    %c0_i32 = arith.constant 0 : i32
    %c0_i32_0 = arith.constant 0 : i32
    %c0_i32_1 = arith.constant 0 : i32
    return %c0_i32, %c0_i32_0 : i32, i32
  }
  func.func @transform_6(%arg0: i32) -> (i32, i32) {
    %c0_i32 = arith.constant 0 : i32
    %c0_i32_0 = arith.constant 0 : i32
    %c0_i32_1 = arith.constant 0 : i32
    return %c0_i32, %c0_i32_0 : i32, i32
  }
  func.func @transform_7(%arg0: i32) -> (i32, i32) {
    %c0_i32 = arith.constant 0 : i32
    %c0_i32_0 = arith.constant 0 : i32
    return %c0_i32, %arg0 : i32, i32
  }
}

</mosaic_0001>

<bundles_post_ra>
// kernel: net_forward.1
= control target key start
LH: loop header
LB: loop body
LE: loop exit
PB: predicated region body
PF: predicated region fallthrough
CT: control target
= control target key end

     0   :  { %s2186_s0 = inlined_call_operand.vmem [shape: f32[1,1000], index: 0, kind: input, shape index: {}]   ;;  %s2187_s1 = inlined_call_operand.vmem [shape: f32[128,1], index: 1, kind: input, shape index: {}]   ;;  %s2188_s2 = inlined_call_operand.vmem [shape: f32[128,1], index: 2, kind: input, shape index: {}]   ;;  %s2189_s3 = inlined_call_operand.vmem [shape: f32[24,128], index: 3, kind: input, shape index: {}]   ;;  %s2190_s4 = inlined_call_operand.vmem [shape: f32[24,1], index: 4, kind: input, shape index: {}]   ;;  %s2191_s5 = inlined_call_operand.vmem [shape: f32[24,1], index: 5, kind: input, shape index: {}]   ;;  %s2192_s6 = inlined_call_operand.<no memory space> [shape: f32[1,1], index: 6, kind: input, shape index: {}]   ;;  %s2193_s7 = inlined_call_operand.hbm [shape: f32[1,1000], index: 7, kind: output, shape index: {}]  }
   0x1   :  { %v12_v0 = vstv %s2192_s6 }
   0x2   :  { %13 = vst [vmem:[#allocation2] sm:$0x1] %v12_v0 }
   0x3   :  { %v295_v1 = vld [vmem:[%s2188_s2] sm:$0xff]  ;;  %v1387_v3 = vmov 0   ;;  %v296_v4 = vld [vmem:[%s2188_s2 + $0x8] sm:$0xff]  ;;  %v33_v6 = vld [vmem:[%s2187_s1 + $0x18] sm:$0xff] }
   0x4   :  { %v30_v2 = vld [vmem:[%s2187_s1] sm:$0xff]  ;;  %1362 = vset.pattern.permute.xlu1 %v1387_v3  ;;  %1361 = vset.pattern.permute.xlu0 %v1387_v3  ;;  %v31_v5 = vld [vmem:[%s2187_s1 + $0x8] sm:$0xff]  ;;  %v32_v7 = vld [vmem:[%s2187_s1 + $0x10] sm:$0xff] }
   0x5   :  { %313 = vperm.xlu1 %1362, %v295_v1   ;;  %48 = vperm.xlu0 %1361, %v30_v2   ;;  %v298_v8 = vld [vmem:[%s2188_s2 + $0x18] sm:$0xff]  ;;  %v297_v9 = vld [vmem:[%s2188_s2 + $0x10] sm:$0xff] }
   0x9   :  { %318 = vperm.xlu1 %1362, %v296_v4   ;;  %53 = vperm.xlu0 %1361, %v31_v5  }
   0xd   :  { %63 = vperm.xlu1 %1362, %v33_v6   ;;  %58 = vperm.xlu0 %1361, %v32_v7  }
   0xe   :  { %14 = vsyncpa [#allocation4], 0  ;;  %v35_v10 = vld [vmem:[%s2187_s1 + $0x28] sm:$0xff]  ;;  %v34_v11 = vld [vmem:[%s2187_s1 + $0x20] sm:$0xff]  ;;  %v2196_v40 = vmov 0.0   ;;  %v2194_v42 = vlaneseq  ;;  %vm1122_vm0 = vcmask 850944  }
   0xf   :  { %v300_v12 = vld [vmem:[%s2188_s2 + $0x28] sm:$0xff]  ;;  %v299_v13 = vld [vmem:[%s2188_s2 + $0x20] sm:$0xff]  ;;  %v37_v14 = vld [vmem:[%s2187_s1 + $0x38] sm:$0xff]  ;;  %732 = vmatprep.mubr.f32.mxu0 %v2196_v40  ;;  %815 = vmatprep.mubr.f32.mxu1 %v2196_v40 }
  0x10   :  { %v36_v15 = vld [vmem:[%s2187_s1 + $0x30] sm:$0xff]  ;;  %v302_v16 = vld [vmem:[%s2188_s2 + $0x38] sm:$0xff]  ;;  %v39_v18 = vld [vmem:[%s2187_s1 + $0x48] sm:$0xff]  ;;  %v1551_v43 = vshrl.u32 %v2194_v42, 7 }
  0x11   :  { %328 = vperm.xlu1 %1362, %v298_v8   ;;  %323 = vperm.xlu0 %1361, %v297_v9   ;;  %v301_v17 = vld [vmem:[%s2188_s2 + $0x30] sm:$0xff]  ;;  %v38_v19 = vld [vmem:[%s2187_s1 + $0x40] sm:$0xff]  ;;  %v304_v20 = vld [vmem:[%s2188_s2 + $0x48] sm:$0xff] }
  0x12   :  { %v303_v21 = vld [vmem:[%s2188_s2 + $0x40] sm:$0xff]  ;;  %v41_v22 = vld [vmem:[%s2187_s1 + $0x58] sm:$0xff]  ;;  %v40_v23 = vld [vmem:[%s2187_s1 + $0x50] sm:$0xff]  ;;  %2200 = vst [vmem:[#allocation6_spill] sm:$0xff] %v1551_v43  ;;  %v133_v44 = vsub.s32 1, %v1551_v43  ;;  %v141_v45 = vsub.s32 3, %v1551_v43 }
  0x13   :  { %v306_v24 = vld [vmem:[%s2188_s2 + $0x58] sm:$0xff]  ;;  %v305_v25 = vld [vmem:[%s2188_s2 + $0x50] sm:$0xff]  ;;  %v43_v26 = vld [vmem:[%s2187_s1 + $0x68] sm:$0xff]  ;;  %v2195_v46 = vsub.s32 0, %v1551_v43  ;;  %v137_v47 = vsub.s32 2, %v1551_v43  ;;  %v149_v49 = vsub.s32 5, %v1551_v43 }
  0x14   :  { %v42_v27 = vld [vmem:[%s2187_s1 + $0x60] sm:$0xff]  ;;  %v308_v28 = vld [vmem:[%s2188_s2 + $0x68] sm:$0xff]  ;;  %v45_v30 = vld [vmem:[%s2187_s1 + $0x78] sm:$0xff]  ;;  %v157_v50 = vsub.s32 7, %v1551_v43  ;;  %v145_v51 = vsub.s32 4, %v1551_v43  ;;  %v153_v52 = vsub.s32 6, %v1551_v43 }
  0x15   :  { %73 = vperm.xlu1 %1362, %v35_v10   ;;  %68 = vperm.xlu0 %1361, %v34_v11   ;;  %v307_v29 = vld [vmem:[%s2188_s2 + $0x60] sm:$0xff]  ;;  %v44_v31 = vld [vmem:[%s2187_s1 + $0x70] sm:$0xff]  ;;  %v310_v32 = vld [vmem:[%s2188_s2 + $0x78] sm:$0xff] }
  0x16   :  { %v309_v33 = vld [vmem:[%s2188_s2 + $0x70] sm:$0xff]  ;;  %v651_v34 = vld [vmem:[%s2190_s4 + $0x8] sm:$0xff]  ;;  %v650_v35 = vld [vmem:[%s2190_s4] sm:$0xff] }
  0x17   :  { %v1024_v36 = vld [vmem:[%s2191_s5] sm:$0xff]  ;;  %v652_v37 = vld [vmem:[%s2190_s4 + $0x10] sm:$0xff]  ;;  %v1025_v39 = vld [vmem:[%s2191_s5 + $0x8] sm:$0xff] }
  0x18   :  { %v1026_v38 = vld [vmem:[%s2191_s5 + $0x10] sm:$0xff]  ;;  %v1134_v41 = vld [vmem:[#allocation2] sm:$0x1] }
  0x19   :  { %338 = vperm.xlu1 %1362, %v300_v12   ;;  %333 = vperm.xlu0 %1361, %v299_v13   ;;  %v29_v48 = vld [vmem:[%s2186_s0] sm:$0xff] }
  0x1a   :  { %v1564_v53 = vrot.slane %v29_v48, %v133_v44  ;;  %v1566_v54 = vrot.slane %v29_v48, %v141_v45  ;;  %v1570_v55 = vrot.slane %v29_v48, %v2195_v46  ;;  %v1572_v56 = vrot.slane %v29_v48, %v137_v47 }
  0x1b   :  { %v1574_v57 = vrot.slane %v29_v48, %v149_v49  ;;  %v1576_v58 = vrot.slane %v29_v48, %v157_v50  ;;  %v1578_v59 = vrot.slane %v29_v48, %v145_v51  ;;  %v1580_v60 = vrot.slane %v29_v48, %v153_v52 }
  0x1d   :  { %83 = vperm.xlu1 %1362, %v37_v14   ;;  %78 = vperm.xlu0 %1361, %v36_v15  }
  0x21   :  { %348 = vperm.xlu1 %1362, %v302_v16   ;;  %343 = vperm.xlu0 %1361, %v301_v17  }
  0x25   :  { %93 = vperm.xlu1 %1362, %v39_v18   ;;  %88 = vperm.xlu0 %1361, %v38_v19  }
  0x29   :  { %358 = vperm.xlu1 %1362, %v304_v20   ;;  %353 = vperm.xlu0 %1361, %v303_v21  }
  0x2d   :  { %103 = vperm.xlu1 %1362, %v41_v22   ;;  %98 = vperm.xlu0 %1361, %v40_v23  }
  0x31   :  { %368 = vperm.xlu1 %1362, %v306_v24   ;;  %363 = vperm.xlu0 %1361, %v305_v25  }
  0x35   :  { %113 = vperm.xlu1 %1362, %v43_v26   ;;  %108 = vperm.xlu0 %1361, %v42_v27  }
  0x39   :  { %378 = vperm.xlu1 %1362, %v308_v28   ;;  %373 = vperm.xlu0 %1361, %v307_v29  }
  0x3d   :  { %123 = vperm.xlu1 %1362, %v45_v30   ;;  %118 = vperm.xlu0 %1361, %v44_v31  }
  0x41   :  { %388 = vperm.xlu1 %1362, %v310_v32   ;;  %383 = vperm.xlu0 %1361, %v309_v33  }
  0x45   :  { %660 = vperm.xlu1 %1362, %v651_v34   ;;  %655 = vperm.xlu0 %1361, %v650_v35  }
  0x49   :  { %1029 = vperm.xlu1 %1362, %v1024_v36   ;;  %665 = vperm.xlu0 %1361, %v652_v37  }
  0x4d   :  { %1039 = vperm.xlu1 %1362, %v1026_v38   ;;  %1034 = vperm.xlu0 %1361, %v1025_v39  }
  0x51   :  { %1137 = vperm.xlu0 %1361, %v1134_v41  }
  0x84   :  { %v314_v61 = vpop.permute.xlu1 %313  ;;  %v49_v62 = vpop.permute.xlu0 %48 }
  0x85   :  { %v168_v63 = vmul.f32 %v1564_v53, %v49_v62  ;;  %v170_v0 = vmul.f32 %v1566_v54, %v49_v62  ;;  %v167_v1 = vmul.f32 %v1570_v55, %v49_v62  ;;  %v169_v2 = vmul.f32 %v1572_v56, %v49_v62 }
  0x86   :  { %v172_v3 = vmul.f32 %v1574_v57, %v49_v62  ;;  %v174_v4 = vmul.f32 %v1576_v58, %v49_v62  ;;  %v171_v5 = vmul.f32 %v1578_v59, %v49_v62  ;;  %v173_v6 = vmul.f32 %v1580_v60, %v49_v62 }
  0x87   :  { %v392_v7 = vadd.f32 %v314_v61, %v168_v63  ;;  %v394_v8 = vadd.f32 %v314_v61, %v170_v0  ;;  %v391_v9 = vadd.f32 %v314_v61, %v167_v1  ;;  %v393_v10 = vadd.f32 %v314_v61, %v169_v2 }
  0x88   :  { %v1590_v11 = vpop.permute.xlu1 %318  ;;  %v1592_v12 = vpop.permute.xlu0 %53  ;;  %v1594_v13 = vadd.f32 %v314_v61, %v172_v3  ;;  %v1596_v14 = vadd.f32 %v314_v61, %v174_v4  ;;  %v1602_v17 = vadd.f32 %v314_v61, %v171_v5  ;;  %v1604_v18 = vadd.f32 %v314_v61, %v173_v6 }
  0x89   :  { %v176_v15 = vmul.f32 %v1564_v53, %v1592_v12  ;;  %v178_v16 = vmul.f32 %v1566_v54, %v1592_v12  ;;  %v520_v19 = vmax.f32 %v392_v7, 0.0  ;;  %v522_v20 = vmax.f32 %v394_v8, 0.0 }
  0x8a   :  { %v175_v21 = vmul.f32 %v1570_v55, %v1592_v12  ;;  %v177_v22 = vmul.f32 %v1572_v56, %v1592_v12  ;;  %v519_v25 = vmax.f32 %v391_v9, 0.0  ;;  %v521_v26 = vmax.f32 %v393_v10, 0.0 }
  0x8b   :  { %v400_v23 = vadd.f32 %v1590_v11, %v176_v15  ;;  %v402_v24 = vadd.f32 %v1590_v11, %v178_v16  ;;  %v180_v31 = vmul.f32 %v1574_v57, %v1592_v12  ;;  %v1622_v32 = vmul.f32 %v1576_v58, %v1592_v12 }
  0x8c   :  { %v1612_v27 = vpop.permute.xlu1 %63  ;;  %v1614_v28 = vpop.permute.xlu0 %58  ;;  %v399_v29 = vadd.f32 %v1590_v11, %v175_v21  ;;  %v401_v30 = vadd.f32 %v1590_v11, %v177_v22 }
  0x8d   :  { %v528_v33 = vmax.f32 %v400_v23, 0.0  ;;  %v530_v34 = vmax.f32 %v402_v24, 0.0  ;;  %v184_v35 = vmul.f32 %v1564_v53, %v1614_v28  ;;  %v192_v36 = vmul.f32 %v1564_v53, %v1612_v27 }
  0x8e   :  { %v527_v37 = vmax.f32 %v399_v29, 0.0  ;;  %v529_v38 = vmax.f32 %v401_v30, 0.0  ;;  %v186_v39 = vmul.f32 %v1566_v54, %v1614_v28  ;;  %v194_v41 = vmul.f32 %v1566_v54, %v1612_v27 }
  0x8f   :  { %v1229_v44 = vpack.c.bf16 %v528_v33, %v520_v19  ;;  %v1261_v45 = vpack.c.bf16 %v530_v34, %v522_v20  ;;  %v183_v47 = vmul.f32 %v1570_v55, %v1614_v28  ;;  %v191_v48 = vmul.f32 %v1570_v55, %v1612_v27 }
  0x90   :  { %v1636_v49 = vpop.permute.xlu1 %328  ;;  %v1638_v50 = vpop.permute.xlu0 %323  ;;  %v1231_v51 = vpack.c.bf16 %v527_v37, %v519_v25  ;;  %v1263_v52 = vpack.c.bf16 %v529_v38, %v521_v26  ;;  %v185_v61 = vmul.f32 %v1572_v56, %v1614_v28  ;;  %v193_v62 = vmul.f32 %v1572_v56, %v1612_v27 }
  0x91   :  { %1230 = vmatprep.subr.bf16.mxu0 %v1229_v44  ;;  %1262 = vmatprep.subr.bf16.mxu1 %v1261_v45  ;;  %v408_v63 = vadd.f32 %v1638_v50, %v184_v35  ;;  %v416_v0 = vadd.f32 %v1636_v49, %v192_v36  ;;  %v410_v1 = vadd.f32 %v1638_v50, %v186_v39 }
  0x92   :  { %1232 = vmatpush1.bf16.msra.mxu0 %v1231_v51  ;;  %1264 = vmatpush1.bf16.msra.mxu1 %v1263_v52  ;;  %v418_v2 = vadd.f32 %v1636_v49, %v194_v41  ;;  %v407_v3 = vadd.f32 %v1638_v50, %v183_v47  ;;  %v415_v4 = vadd.f32 %v1636_v49, %v191_v48 }
  0x93   :  { %v536_v5 = vmax.f32 %v408_v63, 0.0  ;;  %v544_v6 = vmax.f32 %v416_v0, 0.0  ;;  %v538_v7 = vmax.f32 %v410_v1, 0.0  ;;  %v409_v8 = vadd.f32 %v1638_v50, %v185_v61 }
  0x94   :  { %v1651_v9 = vpop.permute.xlu1 %73  ;;  %v1653_v10 = vpop.permute.xlu0 %68  ;;  %v546_v15 = vmax.f32 %v418_v2, 0.0  ;;  %v535_v16 = vmax.f32 %v407_v3, 0.0  ;;  %v543_v19 = vmax.f32 %v415_v4, 0.0  ;;  %v417_v20 = vadd.f32 %v1636_v49, %v193_v62 }
  0x95   :  { %v1233_v21 = vpack.c.bf16 %v544_v6, %v536_v5  ;;  %v537_v22 = vmax.f32 %v409_v8, 0.0  ;;  %v200_v23 = vmul.f32 %v1564_v53, %v1653_v10  ;;  %v208_v24 = vmul.f32 %v1564_v53, %v1651_v9 }
  0x96   :  { %v1265_v25 = vpack.c.bf16 %v546_v15, %v538_v7  ;;  %v1235_v26 = vpack.c.bf16 %v543_v19, %v535_v16  ;;  %v545_v29 = vmax.f32 %v417_v20, 0.0  ;;  %v202_v30 = vmul.f32 %v1566_v54, %v1653_v10 }
  0x97   :  { %1234 = vmatprep.subr.bf16.mxu0 %v1233_v21  ;;  %v210_v33 = vmul.f32 %v1566_v54, %v1651_v9  ;;  %v199_v34 = vmul.f32 %v1570_v55, %v1653_v10  ;;  %v207_v35 = vmul.f32 %v1570_v55, %v1651_v9  ;;  %v201_v36 = vmul.f32 %v1572_v56, %v1653_v10 }
  0x98   :  { %1266 = vmatprep.subr.bf16.mxu1 %v1265_v25  ;;  %v1670_v37 = vpop.permute.xlu1 %338  ;;  %v1672_v38 = vpop.permute.xlu0 %333  ;;  %1236 = vmatpush1.bf16.msra.mxu0 %v1235_v26  ;;  %v1267_v39 = vpack.c.bf16 %v545_v29, %v537_v22  ;;  %v209_v41 = vmul.f32 %v1572_v56, %v1651_v9  ;;  %v1677_v44 = vadd.f32 %v1590_v11, %v180_v31 }
  0x99   :  { %v424_v45 = vadd.f32 %v1672_v38, %v200_v23  ;;  %v432_v47 = vadd.f32 %v1670_v37, %v208_v24  ;;  %v426_v48 = vadd.f32 %v1672_v38, %v202_v30  ;;  %v434_v51 = vadd.f32 %v1670_v37, %v210_v33 }
  0x9a   :  { %1268 = vmatpush1.bf16.msra.mxu1 %v1267_v39  ;;  %v423_v52 = vadd.f32 %v1672_v38, %v199_v34  ;;  %v431_v61 = vadd.f32 %v1670_v37, %v207_v35  ;;  %v425_v62 = vadd.f32 %v1672_v38, %v201_v36  ;;  %v433_v63 = vadd.f32 %v1670_v37, %v209_v41 }
  0x9b   :  { %v552_v0 = vmax.f32 %v424_v45, 0.0  ;;  %v560_v31 = vmax.f32 %v432_v47, 0.0  ;;  %v554_v1 = vmax.f32 %v426_v48, 0.0  ;;  %v562_v2 = vmax.f32 %v434_v51, 0.0 }
  0x9c   :  { %v1687_v3 = vpop.permute.xlu1 %83  ;;  %v1689_v4 = vpop.permute.xlu0 %78  ;;  %v551_v5 = vmax.f32 %v423_v52, 0.0  ;;  %v559_v6 = vmax.f32 %v431_v61, 0.0  ;;  %v553_v7 = vmax.f32 %v425_v62, 0.0  ;;  %v561_v8 = vmax.f32 %v433_v63, 0.0 }
  0x9d   :  { %v1237_v15 = vpack.c.bf16 %v560_v31, %v552_v0  ;;  %v1269_v16 = vpack.c.bf16 %v562_v2, %v554_v1  ;;  %v216_v19 = vmul.f32 %v1564_v53, %v1689_v4  ;;  %v224_v20 = vmul.f32 %v1564_v53, %v1687_v3 }
  0x9e   :  { %v1239_v21 = vpack.c.bf16 %v559_v6, %v551_v5  ;;  %v1271_v22 = vpack.c.bf16 %v561_v8, %v553_v7  ;;  %v218_v23 = vmul.f32 %v1566_v54, %v1689_v4  ;;  %v226_v24 = vmul.f32 %v1566_v54, %v1687_v3 }
  0x9f   :  { %1238 = vmatprep.subr.bf16.mxu0 %v1237_v15  ;;  %1270 = vmatprep.subr.bf16.mxu1 %v1269_v16  ;;  %v215_v25 = vmul.f32 %v1570_v55, %v1689_v4  ;;  %v223_v26 = vmul.f32 %v1570_v55, %v1687_v3  ;;  %v217_v29 = vmul.f32 %v1572_v56, %v1689_v4  ;;  %v524_v30 = vmax.f32 %v1594_v13, 0.0 }
  0xa0   :  { %v1706_v33 = vpop.permute.xlu1 %348  ;;  %v1708_v34 = vpop.permute.xlu0 %343  ;;  %1240 = vmatpush1.bf16.msra.mxu0 %v1239_v21  ;;  %1272 = vmatpush1.bf16.msra.mxu1 %v1271_v22  ;;  %v225_v35 = vmul.f32 %v1572_v56, %v1687_v3  ;;  %v532_v36 = vmax.f32 %v1677_v44, 0.0  ;;  %v1715_v39 = vadd.f32 %v1590_v11, %v1622_v32  ;;  %v179_v41 = vmul.f32 %v1578_v59, %v1592_v12 }
  0xa1   :  { %v440_v13 = vadd.f32 %v1708_v34, %v216_v19  ;;  %v448_v45 = vadd.f32 %v1706_v33, %v224_v20  ;;  %v442_v47 = vadd.f32 %v1708_v34, %v218_v23  ;;  %v450_v48 = vadd.f32 %v1706_v33, %v226_v24 }
  0xa2   :  { %v439_v51 = vadd.f32 %v1708_v34, %v215_v25  ;;  %v447_v52 = vadd.f32 %v1706_v33, %v223_v26  ;;  %v441_v44 = vadd.f32 %v1708_v34, %v217_v29  ;;  %v449_v32 = vadd.f32 %v1706_v33, %v225_v35 }
  0xa3   :  { %v568_v61 = vmax.f32 %v440_v13, 0.0  ;;  %v576_v62 = vmax.f32 %v448_v45, 0.0  ;;  %v570_v63 = vmax.f32 %v442_v47, 0.0  ;;  %v578_v0 = vmax.f32 %v450_v48, 0.0 }
  0xa4   :  { %v1727_v31 = vpop.permute.xlu1 %93  ;;  %v1729_v1 = vpop.permute.xlu0 %88  ;;  %v567_v2 = vmax.f32 %v439_v51, 0.0  ;;  %v575_v5 = vmax.f32 %v447_v52, 0.0  ;;  %v569_v6 = vmax.f32 %v441_v44, 0.0  ;;  %v577_v7 = vmax.f32 %v449_v32, 0.0 }
  0xa5   :  { %v1241_v8 = vpack.c.bf16 %v576_v62, %v568_v61  ;;  %v1273_v15 = vpack.c.bf16 %v578_v0, %v570_v63  ;;  %v232_v16 = vmul.f32 %v1564_v53, %v1729_v1  ;;  %v240_v19 = vmul.f32 %v1564_v53, %v1727_v31 }
  0xa6   :  { %v1243_v20 = vpack.c.bf16 %v575_v5, %v567_v2  ;;  %v1275_v21 = vpack.c.bf16 %v577_v7, %v569_v6  ;;  %v234_v22 = vmul.f32 %v1566_v54, %v1729_v1  ;;  %v242_v23 = vmul.f32 %v1566_v54, %v1727_v31 }
  0xa7   :  { %1242 = vmatprep.subr.bf16.mxu0 %v1241_v8  ;;  %1274 = vmatprep.subr.bf16.mxu1 %v1273_v15  ;;  %v231_v24 = vmul.f32 %v1570_v55, %v1729_v1  ;;  %v239_v25 = vmul.f32 %v1570_v55, %v1727_v31  ;;  %v233_v26 = vmul.f32 %v1572_v56, %v1729_v1  ;;  %v526_v29 = vmax.f32 %v1596_v14, 0.0 }
  0xa8   :  { %v1746_v35 = vpop.permute.xlu1 %358  ;;  %v1748_v13 = vpop.permute.xlu0 %353  ;;  %1244 = vmatpush1.bf16.msra.mxu0 %v1243_v20  ;;  %1276 = vmatpush1.bf16.msra.mxu1 %v1275_v21  ;;  %v241_v45 = vmul.f32 %v1572_v56, %v1727_v31  ;;  %v1752_v47 = vpack.c.bf16 %v532_v36, %v524_v30  ;;  %v534_v48 = vmax.f32 %v1715_v39, 0.0  ;;  %v1756_v51 = vadd.f32 %v1590_v11, %v179_v41 }
  0xa9   :  { %v456_v52 = vadd.f32 %v1748_v13, %v232_v16  ;;  %v464_v14 = vadd.f32 %v1746_v35, %v240_v19  ;;  %v458_v44 = vadd.f32 %v1748_v13, %v234_v22  ;;  %v466_v32 = vadd.f32 %v1746_v35, %v242_v23 }
  0xaa   :  { %v455_v61 = vadd.f32 %v1748_v13, %v231_v24  ;;  %v463_v62 = vadd.f32 %v1746_v35, %v239_v25  ;;  %v457_v30 = vadd.f32 %v1748_v13, %v233_v26  ;;  %v465_v36 = vadd.f32 %v1746_v35, %v241_v45 }
  0xab   :  { %v584_v39 = vmax.f32 %v456_v52, 0.0  ;;  %v592_v63 = vmax.f32 %v464_v14, 0.0  ;;  %v586_v41 = vmax.f32 %v458_v44, 0.0  ;;  %v594_v0 = vmax.f32 %v466_v32, 0.0 }
  0xac   :  { %v1766_v2 = vpop.permute.xlu1 %103  ;;  %v1768_v5 = vpop.permute.xlu0 %98  ;;  %v583_v6 = vmax.f32 %v455_v61, 0.0  ;;  %v591_v7 = vmax.f32 %v463_v62, 0.0  ;;  %v585_v8 = vmax.f32 %v457_v30, 0.0  ;;  %v593_v15 = vmax.f32 %v465_v36, 0.0 }
  0xad   :  { %v1245_v16 = vpack.c.bf16 %v592_v63, %v584_v39  ;;  %v1277_v19 = vpack.c.bf16 %v594_v0, %v586_v41  ;;  %v248_v20 = vmul.f32 %v1564_v53, %v1768_v5  ;;  %v256_v21 = vmul.f32 %v1564_v53, %v1766_v2 }
  0xae   :  { %v1247_v22 = vpack.c.bf16 %v591_v7, %v583_v6  ;;  %v1279_v23 = vpack.c.bf16 %v593_v15, %v585_v8  ;;  %v250_v24 = vmul.f32 %v1566_v54, %v1768_v5  ;;  %v258_v25 = vmul.f32 %v1566_v54, %v1766_v2 }
  0xaf   :  { %1246 = vmatprep.subr.bf16.mxu0 %v1245_v16  ;;  %1278 = vmatprep.subr.bf16.mxu1 %v1277_v19  ;;  %v247_v26 = vmul.f32 %v1570_v55, %v1768_v5  ;;  %v255_v45 = vmul.f32 %v1570_v55, %v1766_v2  ;;  %v249_v52 = vmul.f32 %v1572_v56, %v1768_v5  ;;  %v523_v14 = vmax.f32 %v1602_v17, 0.0 }
  0xb0   :  { %v1785_v44 = vpop.permute.xlu1 %368  ;;  %v1787_v32 = vpop.permute.xlu0 %363  ;;  %1248 = vmatpush1.bf16.msra.mxu0 %v1247_v22  ;;  %1280 = vmatpush1.bf16.msra.mxu1 %v1279_v23  ;;  %v257_v61 = vmul.f32 %v1572_v56, %v1766_v2  ;;  %v1791_v62 = vpack.c.bf16 %v534_v48, %v526_v29  ;;  %v531_v30 = vmax.f32 %v1756_v51, 0.0  ;;  %v181_v36 = vmul.f32 %v1580_v60, %v1592_v12 }
  0xb1   :  { %v472_v39 = vadd.f32 %v1787_v32, %v248_v20  ;;  %v480_v17 = vadd.f32 %v1785_v44, %v256_v21  ;;  %v474_v63 = vadd.f32 %v1787_v32, %v250_v24  ;;  %v482_v41 = vadd.f32 %v1785_v44, %v258_v25 }
  0xb2   :  { %v471_v0 = vadd.f32 %v1787_v32, %v247_v26  ;;  %v479_v6 = vadd.f32 %v1785_v44, %v255_v45  ;;  %v473_v29 = vadd.f32 %v1787_v32, %v249_v52  ;;  %v481_v48 = vadd.f32 %v1785_v44, %v257_v61 }
  0xb3   :  { %v600_v51 = vmax.f32 %v472_v39, 0.0  ;;  %v608_v7 = vmax.f32 %v480_v17, 0.0  ;;  %v602_v8 = vmax.f32 %v474_v63, 0.0  ;;  %v610_v12 = vmax.f32 %v482_v41, 0.0 }
  0xb4   :  { %v1804_v15 = vpop.permute.xlu1 %113  ;;  %v1806_v16 = vpop.permute.xlu0 %108  ;;  %v599_v19 = vmax.f32 %v471_v0, 0.0  ;;  %v607_v20 = vmax.f32 %v479_v6, 0.0  ;;  %v601_v21 = vmax.f32 %v473_v29, 0.0  ;;  %v609_v22 = vmax.f32 %v481_v48, 0.0 }
  0xb5   :  { %v1249_v23 = vpack.c.bf16 %v608_v7, %v600_v51  ;;  %v1281_v24 = vpack.c.bf16 %v610_v12, %v602_v8  ;;  %v264_v25 = vmul.f32 %v1564_v53, %v1806_v16  ;;  %v272_v26 = vmul.f32 %v1564_v53, %v1804_v15 }
  0xb6   :  { %v1251_v45 = vpack.c.bf16 %v607_v20, %v599_v19  ;;  %v1283_v52 = vpack.c.bf16 %v609_v22, %v601_v21  ;;  %v266_v61 = vmul.f32 %v1566_v54, %v1806_v16  ;;  %v274_v39 = vmul.f32 %v1566_v54, %v1804_v15 }
  0xb7   :  { %1250 = vmatprep.subr.bf16.mxu0 %v1249_v23  ;;  %1282 = vmatprep.subr.bf16.mxu1 %v1281_v24  ;;  %v263_v17 = vmul.f32 %v1570_v55, %v1806_v16  ;;  %v271_v63 = vmul.f32 %v1570_v55, %v1804_v15  ;;  %v265_v41 = vmul.f32 %v1572_v56, %v1806_v16 }
  0xb8   :  { %v1822_v0 = vpop.permute.xlu1 %378  ;;  %v1824_v6 = vpop.permute.xlu0 %373  ;;  %1252 = vmatpush1.bf16.msra.mxu0 %v1251_v45  ;;  %1284 = vmatpush1.bf16.msra.mxu1 %v1283_v52  ;;  %v273_v29 = vmul.f32 %v1572_v56, %v1804_v15  ;;  %v1828_v48 = vpack.c.bf16 %v531_v30, %v523_v14  ;;  %v405_v51 = vadd.f32 %v1590_v11, %v181_v36 }
  0xb9   :  { %v488_v7 = vadd.f32 %v1824_v6, %v264_v25  ;;  %v496_v8 = vadd.f32 %v1822_v0, %v272_v26  ;;  %v490_v12 = vadd.f32 %v1824_v6, %v266_v61  ;;  %v498_v19 = vadd.f32 %v1822_v0, %v274_v39 }
  0xba   :  { %v487_v20 = vadd.f32 %v1824_v6, %v263_v17  ;;  %v495_v21 = vadd.f32 %v1822_v0, %v271_v63  ;;  %v489_v22 = vadd.f32 %v1824_v6, %v265_v41  ;;  %v497_v23 = vadd.f32 %v1822_v0, %v273_v29 }
  0xbb   :  { %v616_v14 = vmax.f32 %v488_v7, 0.0  ;;  %v624_v30 = vmax.f32 %v496_v8, 0.0  ;;  %v618_v24 = vmax.f32 %v490_v12, 0.0  ;;  %v626_v11 = vmax.f32 %v498_v19, 0.0 }
  0xbc   :  { %v1839_v36 = vpop.permute.xlu1 %123  ;;  %v1841_v25 = vpop.permute.xlu0 %118  ;;  %v615_v26 = vmax.f32 %v487_v20, 0.0  ;;  %v623_v45 = vmax.f32 %v495_v21, 0.0  ;;  %v617_v52 = vmax.f32 %v489_v22, 0.0  ;;  %v625_v61 = vmax.f32 %v497_v23, 0.0 }
  0xbd   :  { %v1253_v39 = vpack.c.bf16 %v624_v30, %v616_v14  ;;  %v1285_v17 = vpack.c.bf16 %v626_v11, %v618_v24  ;;  %v280_v63 = vmul.f32 %v1564_v53, %v1841_v25  ;;  %v288_v41 = vmul.f32 %v1564_v53, %v1839_v36 }
  0xbe   :  { %v1255_v29 = vpack.c.bf16 %v623_v45, %v615_v26  ;;  %v1287_v7 = vpack.c.bf16 %v625_v61, %v617_v52  ;;  %v282_v8 = vmul.f32 %v1566_v54, %v1841_v25  ;;  %v290_v12 = vmul.f32 %v1566_v54, %v1839_v36 }
  0xbf   :  { %1254 = vmatprep.subr.bf16.mxu0 %v1253_v39  ;;  %1286 = vmatprep.subr.bf16.mxu1 %v1285_v17  ;;  %v279_v19 = vmul.f32 %v1570_v55, %v1841_v25  ;;  %v287_v20 = vmul.f32 %v1570_v55, %v1839_v36  ;;  %v281_v21 = vmul.f32 %v1572_v56, %v1841_v25  ;;  %v525_v53 = vmax.f32 %v1604_v18, 0.0 }
  0xc0   :  { %v1858_v22 = vpop.permute.xlu1 %388  ;;  %v1860_v23 = vpop.permute.xlu0 %383  ;;  %1256 = vmatpush1.bf16.msra.mxu0 %v1255_v29  ;;  %1288 = vmatpush1.bf16.msra.mxu1 %v1287_v7  ;;  %v289_v54 = vmul.f32 %v1572_v56, %v1839_v36  ;;  %v533_v14 = vmax.f32 %v405_v51, 0.0  ;;  %v188_v30 = vmul.f32 %v1574_v57, %v1614_v28  ;;  %v196_v55 = vmul.f32 %v1574_v57, %v1612_v27 }
  0xc1   :  { %v504_v24 = vadd.f32 %v1860_v23, %v280_v63  ;;  %v512_v18 = vadd.f32 %v1858_v22, %v288_v41  ;;  %v506_v11 = vadd.f32 %v1860_v23, %v282_v8  ;;  %v514_v26 = vadd.f32 %v1858_v22, %v290_v12 }
  0xc2   :  { %v503_v45 = vadd.f32 %v1860_v23, %v279_v19  ;;  %v511_v52 = vadd.f32 %v1858_v22, %v287_v20  ;;  %v505_v56 = vadd.f32 %v1860_v23, %v281_v21  ;;  %v513_v51 = vadd.f32 %v1858_v22, %v289_v54 }
  0xc3   :  { %v632_v61 = vmax.f32 %v504_v24, 0.0  ;;  %v640_v39 = vmax.f32 %v512_v18, 0.0  ;;  %v634_v17 = vmax.f32 %v506_v11, 0.0  ;;  %v642_v29 = vmax.f32 %v514_v26, 0.0 }
  0xc4   :  { %v631_v7 = vmax.f32 %v503_v45, 0.0  ;;  %v639_v63 = vmax.f32 %v511_v52, 0.0  ;;  %v633_v42 = vmax.f32 %v505_v56, 0.0  ;;  %v641_v41 = vmax.f32 %v513_v51, 0.0 }
  0xc5   :  { %v1257_v46 = vpack.c.bf16 %v640_v39, %v632_v61  ;;  %v1289_v8 = vpack.c.bf16 %v642_v29, %v634_v17  ;;  %v1327_v40 = vpack.c.bf16 %v533_v14, %v525_v53  ;;  %v412_v12 = vadd.f32 %v1638_v50, %v188_v30  ;;  %v1911_v61 = vld [vmem:[%s2189_s3 + $0x8] sm:$0xff] }
  0xc6   :  { %v1259_v19 = vpack.c.bf16 %v639_v63, %v631_v7  ;;  %v1291_v43 = vpack.c.bf16 %v641_v41, %v633_v42  ;;  %v420_v20 = vadd.f32 %v1636_v49, %v196_v55  ;;  %v190_v21 = vmul.f32 %v1576_v58, %v1614_v28  ;;  %v1889_v42 = vld [vmem:[%s2189_s3] sm:$0xff] }
  0xc7   :  { %1258 = vmatprep.subr.bf16.mxu0 %v1257_v46  ;;  %1290 = vmatprep.subr.bf16.mxu1 %v1289_v8  ;;  %v540_v54 = vmax.f32 %v412_v12, 0.0  ;;  %v198_v24 = vmul.f32 %v1576_v58, %v1612_v27  ;;  %v187_v18 = vmul.f32 %v1578_v59, %v1614_v28  ;;  %v195_v53 = vmul.f32 %v1578_v59, %v1612_v27 }
  0xc8   :  { %1260 = vmatpush1.bf16.msra.mxu0 %v1259_v19  ;;  %1292 = vmatpush1.bf16.msra.mxu1 %v1291_v43  ;;  %v548_v14 = vmax.f32 %v420_v20, 0.0  ;;  %v414_v46 = vadd.f32 %v1638_v50, %v190_v21  ;;  %v189_v30 = vmul.f32 %v1580_v60, %v1614_v28  ;;  %v197_v55 = vmul.f32 %v1580_v60, %v1612_v27 }
  0xc9   :  { %1294 = vmatprep.subr.bf16.mxu0 %v1752_v47  ;;  %1326 = vmatprep.subr.bf16.mxu1 %v1791_v62  ;;  %v422_v43 = vadd.f32 %v1636_v49, %v198_v24  ;;  %v411_v11 = vadd.f32 %v1638_v50, %v187_v18  ;;  %v419_v26 = vadd.f32 %v1636_v49, %v195_v53  ;;  %v2201_v7 = vmov 0.0  }
  0xca   :  { %v1297_v45 = vpack.c.bf16 %v548_v14, %v540_v54  ;;  %v542_v52 = vmax.f32 %v414_v46, 0.0  ;;  %v413_v56 = vadd.f32 %v1638_v50, %v189_v30  ;;  %v421_v51 = vadd.f32 %v1636_v49, %v197_v55  ;;  %v1936_v14 = vld [vmem:[%s2189_s3 + $0x10] sm:$0xff]  ;;  %s1390_s3 = smov [#allocation3]  }
  0xcb   :  { %733 = vmatmul.mubr.f32.vlgmr.msra.gmra.mrb[0].mxu0 %v1889_v42  ;;  %816 = vmatmul.mubr.f32.vlgmr.msra.gmra.mrb[0].mxu1 %v1889_v42  ;;  %v550_v27 = vmax.f32 %v422_v43, 0.0  ;;  %v539_v28 = vmax.f32 %v411_v11, 0.0  ;;  %v547_v47 = vmax.f32 %v419_v26, 0.0  ;;  %v204_v62 = vmul.f32 %v1574_v57, %v1653_v10  ;;  %s1221_s6 = sshll.u32 %s1390_s3, 4  ;;  %s1222_s6 = int_to_ptr.vmem [resolvable:$true] %s1221_s6 }
  0xcc   :  { %1296 = vmatpush1.bf16.msra.mxu0 %v1828_v48  ;;  %1328 = vmatpush1.bf16.msra.mxu1 %v1327_v40  ;;  %v541_v50 = vmax.f32 %v413_v56, 0.0  ;;  %v549_v49 = vmax.f32 %v421_v51, 0.0  ;;  %v212_v39 = vmul.f32 %v1574_v57, %v1651_v9  ;;  %v206_v17 = vmul.f32 %v1576_v58, %v1653_v10  ;;  %s1363_s10 = scalar_lea.vmem %s1222_s6, 128  ;;  %p1368_p1 = scmp.lt.s32.totalorder %s1222_s6, %s1222_s6 }
  0xcd   :  { %1298 = vmatprep.subr.bf16.mxu0 %v1297_v45  ;;  %v1329_v29 = vpack.c.bf16 %v550_v27, %v542_v52  ;;  %738 = vmatprep.mubr.f32.mxu0 %v2201_v7  ;;  %v1299_v63 = vpack.c.bf16 %v547_v47, %v539_v28  ;;  %v428_v40 = vadd.f32 %v1672_v38, %v204_v62  ;;  %p1364_p0 = scmp.ne.s32.totalorder %s1222_s6, %s1363_s10  ;;  %p1369_p2 = scmp.lt.s32.totalorder %s1363_s10, %s1363_s10 }
  0xce   :  { %821 = vmatprep.mubr.f32.mxu1 %v2201_v7  ;;  %v1331_v48 = vpack.c.bf16 %v549_v49, %v541_v50  ;;  %v436_v41 = vadd.f32 %v1670_v37, %v212_v39  ;;  %v214_v8 = vmul.f32 %v1576_v58, %v1651_v9  ;;  %v430_v12 = vadd.f32 %v1672_v38, %v206_v17 }
  0xcf   :  { %1330 = vmatprep.subr.bf16.mxu1 %v1329_v29  ;;  %739 = vmatmul.mubr.f32.gmra.mrb[2].mxu0 %v1911_v61  ;;  %v556_v19 = vmax.f32 %v428_v40, 0.0  ;;  %v203_v20 = vmul.f32 %v1578_v59, %v1653_v10  ;;  %v211_v21 = vmul.f32 %v1578_v59, %v1651_v9  ;;  %v205_v54 = vmul.f32 %v1580_v60, %v1653_v10  ;;  %p1370_p3 = por %p1369_p2, %p1368_p1 }
  0xd0   :  { %822 = vmatmul.mubr.f32.gmra.mrb[2].mxu1 %v1911_v61  ;;  %1300 = vmatpush1.bf16.msra.mxu0 %v1299_v63  ;;  %v564_v24 = vmax.f32 %v436_v41, 0.0  ;;  %v438_v18 = vadd.f32 %v1670_v37, %v214_v8  ;;  %v558_v53 = vmax.f32 %v430_v12, 0.0  ;;  %v213_v46 = vmul.f32 %v1580_v60, %v1651_v9 }
  0xd1   :  { %1332 = vmatpush1.bf16.msra.mxu1 %v1331_v48  ;;  %744 = vmatprep.mubr.f32.mxu0 %v2201_v7  ;;  %v427_v10 = vadd.f32 %v1672_v38, %v203_v20  ;;  %v435_v30 = vadd.f32 %v1670_v37, %v211_v21  ;;  %v429_v11 = vadd.f32 %v1672_v38, %v205_v54  ;;  %p1371_p4 = pnand %p1370_p3, %p1364_p0 }
  0xd2   :  { %v1301_v55 = vpack.c.bf16 %v564_v24, %v556_v19  ;;  %v566_v43 = vmax.f32 %v438_v18, 0.0  ;;  %827 = vmatprep.mubr.f32.mxu1 %v2201_v7  ;;  %v437_v26 = vadd.f32 %v1670_v37, %v213_v46  ;;  %v220_v9 = vmul.f32 %v1574_v57, %v1689_v4 }
  0xd3   :  { %745 = vmatmul.mubr.f32.gmra.mrb[4].mxu0 %v1936_v14  ;;  %v555_v45 = vmax.f32 %v427_v10, 0.0  ;;  %v563_v52 = vmax.f32 %v435_v30, 0.0  ;;  %v228_v56 = vmul.f32 %v1574_v57, %v1687_v3  ;;  %v557_v27 = vmax.f32 %v429_v11, 0.0 }
  0xd4   :  { %1302 = vmatprep.subr.bf16.mxu0 %v1301_v55  ;;  %v1333_v51 = vpack.c.bf16 %v566_v43, %v558_v53  ;;  %828 = vmatmul.mubr.f32.gmra.mrb[4].mxu1 %v1936_v14  ;;  %v565_v28 = vmax.f32 %v437_v26, 0.0  ;;  %v222_v38 = vmul.f32 %v1576_v58, %v1689_v4  ;;  %v444_v47 = vadd.f32 %v1708_v34, %v220_v9 }
  0xd5   :  { %v1303_v37 = vpack.c.bf16 %v563_v52, %v555_v45  ;;  %v452_v62 = vadd.f32 %v1706_v33, %v228_v56  ;;  %v230_v50 = vmul.f32 %v1576_v58, %v1687_v3  ;;  %898 = vmatprep.mubr.f32.mxu0 %v2201_v7  ;;  %v219_v17 = vmul.f32 %v1578_v59, %v1689_v4 }
  0xd6   :  { %1334 = vmatprep.subr.bf16.mxu1 %v1333_v51  ;;  %v1335_v49 = vpack.c.bf16 %v565_v28, %v557_v27  ;;  %v446_v39 = vadd.f32 %v1708_v34, %v222_v38  ;;  %v227_v29 = vmul.f32 %v1578_v59, %v1687_v3  ;;  %v572_v63 = vmax.f32 %v444_v47, 0.0  ;;  %981 = vmatprep.mubr.f32.mxu1 %v2201_v7 }
  0xd7   :  { %1304 = vmatpush1.bf16.msra.mxu0 %v1303_v37  ;;  %v580_v40 = vmax.f32 %v452_v62, 0.0  ;;  %v454_v48 = vadd.f32 %v1706_v33, %v230_v50  ;;  %v221_v41 = vmul.f32 %v1580_v60, %v1689_v4  ;;  %v443_v12 = vadd.f32 %v1708_v34, %v219_v17 }
  0xd8   :  { %1336 = vmatpush1.bf16.msra.mxu1 %v1335_v49  ;;  %v574_v8 = vmax.f32 %v446_v39, 0.0  ;;  %v451_v19 = vadd.f32 %v1706_v33, %v227_v29  ;;  %v229_v20 = vmul.f32 %v1580_v60, %v1687_v3  ;;  %v236_v18 = vmul.f32 %v1574_v57, %v1729_v1 }
  0xd9   :  { %v1305_v21 = vpack.c.bf16 %v580_v40, %v572_v63  ;;  %v582_v54 = vmax.f32 %v454_v48, 0.0  ;;  %v445_v24 = vadd.f32 %v1708_v34, %v221_v41  ;;  %v571_v53 = vmax.f32 %v443_v12, 0.0 }
  0xda   :  { %v579_v4 = vmax.f32 %v451_v19, 0.0  ;;  %v453_v46 = vadd.f32 %v1706_v33, %v229_v20  ;;  %v244_v10 = vmul.f32 %v1574_v57, %v1727_v31  ;;  %v460_v43 = vadd.f32 %v1748_v13, %v236_v18 }
  0xdb   :  { %1306 = vmatprep.subr.bf16.mxu0 %v1305_v21  ;;  %v1337_v30 = vpack.c.bf16 %v582_v54, %v574_v8  ;;  %v573_v55 = vmax.f32 %v445_v24, 0.0  ;;  %v238_v3 = vmul.f32 %v1576_v58, %v1729_v1  ;;  %v246_v45 = vmul.f32 %v1576_v58, %v1727_v31 }
  0xdc   :  { %v1307_v11 = vpack.c.bf16 %v579_v4, %v571_v53  ;;  %v581_v34 = vmax.f32 %v453_v46, 0.0  ;;  %v468_v26 = vadd.f32 %v1746_v35, %v244_v10  ;;  %v588_v33 = vmax.f32 %v460_v43, 0.0 }
  0xdd   :  { %1338 = vmatprep.subr.bf16.mxu1 %v1337_v30  ;;  %v462_v52 = vadd.f32 %v1748_v13, %v238_v3  ;;  %v235_v9 = vmul.f32 %v1578_v59, %v1729_v1  ;;  %v243_v56 = vmul.f32 %v1578_v59, %v1727_v31  ;;  %v470_v28 = vadd.f32 %v1746_v35, %v246_v45 }
  0xde   :  { %1308 = vmatpush1.bf16.msra.mxu0 %v1307_v11  ;;  %v1339_v51 = vpack.c.bf16 %v581_v34, %v573_v55  ;;  %v596_v27 = vmax.f32 %v468_v26, 0.0  ;;  %v237_v38 = vmul.f32 %v1580_v60, %v1729_v1  ;;  %v245_v50 = vmul.f32 %v1580_v60, %v1727_v31 }
  0xdf   :  { %v590_v37 = vmax.f32 %v462_v52, 0.0  ;;  %v459_v47 = vadd.f32 %v1748_v13, %v235_v9  ;;  %v467_v62 = vadd.f32 %v1746_v35, %v243_v56  ;;  %v598_v39 = vmax.f32 %v470_v28, 0.0 }
  0xe0   :  { %1340 = vmatpush1.bf16.msra.mxu1 %v1339_v51  ;;  %v1309_v49 = vpack.c.bf16 %v596_v27, %v588_v33  ;;  %v461_v17 = vadd.f32 %v1748_v13, %v237_v38  ;;  %v252_v29 = vmul.f32 %v1574_v57, %v1768_v5  ;;  %v469_v1 = vadd.f32 %v1746_v35, %v245_v50 }
  0xe1   :  { %v587_v63 = vmax.f32 %v459_v47, 0.0  ;;  %v595_v40 = vmax.f32 %v467_v62, 0.0  ;;  %v260_v48 = vmul.f32 %v1574_v57, %v1766_v2  ;;  %v1341_v41 = vpack.c.bf16 %v598_v39, %v590_v37 }
  0xe2   :  { %1310 = vmatprep.subr.bf16.mxu0 %v1309_v49  ;;  %v589_v8 = vmax.f32 %v461_v17, 0.0  ;;  %v476_v31 = vadd.f32 %v1787_v32, %v252_v29  ;;  %v254_v12 = vmul.f32 %v1576_v58, %v1768_v5  ;;  %v597_v13 = vmax.f32 %v469_v1, 0.0 }
  0xe3   :  { %v1311_v19 = vpack.c.bf16 %v595_v40, %v587_v63  ;;  %v484_v20 = vadd.f32 %v1785_v44, %v260_v48  ;;  %v262_v21 = vmul.f32 %v1576_v58, %v1766_v2  ;;  %1342 = vmatprep.subr.bf16.mxu1 %v1341_v41  ;;  %v251_v24 = vmul.f32 %v1578_v59, %v1768_v5 }
  0xe4   :  { %v604_v35 = vmax.f32 %v476_v31, 0.0  ;;  %v478_v54 = vadd.f32 %v1787_v32, %v254_v12  ;;  %v259_v18 = vmul.f32 %v1578_v59, %v1766_v2  ;;  %v1343_v53 = vpack.c.bf16 %v597_v13, %v589_v8 }
  0xe5   :  { %1312 = vmatpush1.bf16.msra.mxu0 %v1311_v19  ;;  %v612_v4 = vmax.f32 %v484_v20, 0.0  ;;  %v486_v46 = vadd.f32 %v1785_v44, %v262_v21  ;;  %v253_v10 = vmul.f32 %v1580_v60, %v1768_v5  ;;  %v475_v55 = vadd.f32 %v1787_v32, %v251_v24 }
  0xe6   :  { %v606_v30 = vmax.f32 %v478_v54, 0.0  ;;  %v483_v43 = vadd.f32 %v1785_v44, %v259_v18  ;;  %v261_v3 = vmul.f32 %v1580_v60, %v1766_v2  ;;  %1344 = vmatpush1.bf16.msra.mxu1 %v1343_v53  ;;  %v268_v45 = vmul.f32 %v1574_v57, %v1806_v16 }
  0xe7   :  { %v1313_v11 = vpack.c.bf16 %v612_v4, %v604_v35  ;;  %v614_v34 = vmax.f32 %v486_v46, 0.0  ;;  %v477_v26 = vadd.f32 %v1787_v32, %v253_v10  ;;  %v603_v33 = vmax.f32 %v475_v55, 0.0 }
  0xe8   :  { %v611_v52 = vmax.f32 %v483_v43, 0.0  ;;  %v485_v5 = vadd.f32 %v1785_v44, %v261_v3  ;;  %v276_v9 = vmul.f32 %v1574_v57, %v1804_v15  ;;  %v492_v2 = vadd.f32 %v1824_v6, %v268_v45 }
  0xe9   :  { %1314 = vmatprep.subr.bf16.mxu0 %v1313_v11  ;;  %v1345_v56 = vpack.c.bf16 %v614_v34, %v606_v30  ;;  %v605_v51 = vmax.f32 %v477_v26, 0.0  ;;  %v270_v27 = vmul.f32 %v1576_v58, %v1806_v16  ;;  %v278_v37 = vmul.f32 %v1576_v58, %v1804_v15 }
  0xea   :  { %v1315_v28 = vpack.c.bf16 %v611_v52, %v603_v33  ;;  %v613_v32 = vmax.f32 %v485_v5, 0.0  ;;  %v500_v38 = vadd.f32 %v1822_v0, %v276_v9  ;;  %v620_v44 = vmax.f32 %v492_v2, 0.0 }
  0xeb   :  { %1346 = vmatprep.subr.bf16.mxu1 %v1345_v56  ;;  %v494_v47 = vadd.f32 %v1824_v6, %v270_v27  ;;  %v267_v62 = vmul.f32 %v1578_v59, %v1806_v16  ;;  %v275_v50 = vmul.f32 %v1578_v59, %v1804_v15  ;;  %v502_v17 = vadd.f32 %v1822_v0, %v278_v37 }
  0xec   :  { %1316 = vmatpush1.bf16.msra.mxu0 %v1315_v28  ;;  %v1347_v49 = vpack.c.bf16 %v613_v32, %v605_v51  ;;  %v628_v39 = vmax.f32 %v500_v38, 0.0  ;;  %v269_v29 = vmul.f32 %v1580_v60, %v1806_v16  ;;  %v277_v48 = vmul.f32 %v1580_v60, %v1804_v15 }
  0xed   :  { %v622_v63 = vmax.f32 %v494_v47, 0.0  ;;  %v491_v40 = vadd.f32 %v1824_v6, %v267_v62  ;;  %v499_v1 = vadd.f32 %v1822_v0, %v275_v50  ;;  %v630_v8 = vmax.f32 %v502_v17, 0.0 }
  0xee   :  { %1348 = vmatpush1.bf16.msra.mxu1 %v1347_v49  ;;  %v1317_v41 = vpack.c.bf16 %v628_v39, %v620_v44  ;;  %v493_v31 = vadd.f32 %v1824_v6, %v269_v29  ;;  %v284_v12 = vmul.f32 %v1574_v57, %v1841_v25  ;;  %v501_v16 = vadd.f32 %v1822_v0, %v277_v48 }
  0xef   :  { %v619_v19 = vmax.f32 %v491_v40, 0.0  ;;  %v627_v13 = vmax.f32 %v499_v1, 0.0  ;;  %v292_v20 = vmul.f32 %v1574_v57, %v1839_v36  ;;  %v1349_v21 = vpack.c.bf16 %v630_v8, %v622_v63 }
  0xf0   :  { %1318 = vmatprep.subr.bf16.mxu0 %v1317_v41  ;;  %v621_v35 = vmax.f32 %v493_v31, 0.0  ;;  %v508_v15 = vadd.f32 %v1860_v23, %v284_v12  ;;  %v286_v54 = vmul.f32 %v1576_v58, %v1841_v25  ;;  %v629_v6 = vmax.f32 %v501_v16, 0.0 }
  0xf1   :  { %v1319_v24 = vpack.c.bf16 %v627_v13, %v619_v19  ;;  %v516_v18 = vadd.f32 %v1858_v22, %v292_v20  ;;  %v294_v53 = vmul.f32 %v1576_v58, %v1839_v36  ;;  %1350 = vmatprep.subr.bf16.mxu1 %v1349_v21  ;;  %v283_v57 = vmul.f32 %v1578_v59, %v1841_v25 }
  0xf2   :  { %v636_v0 = vmax.f32 %v508_v15, 0.0  ;;  %v510_v4 = vadd.f32 %v1860_v23, %v286_v54  ;;  %v291_v46 = vmul.f32 %v1578_v59, %v1839_v36  ;;  %v1351_v10 = vpack.c.bf16 %v629_v6, %v621_v35 }
  0xf3   :  { %1320 = vmatpush1.bf16.msra.mxu0 %v1319_v24  ;;  %v644_v30 = vmax.f32 %v516_v18, 0.0  ;;  %v518_v55 = vadd.f32 %v1858_v22, %v294_v53  ;;  %v285_v43 = vmul.f32 %v1580_v60, %v1841_v25  ;;  %v507_v58 = vadd.f32 %v1860_v23, %v283_v57 }
  0xf4   :  { %v638_v3 = vmax.f32 %v510_v4, 0.0  ;;  %v515_v11 = vadd.f32 %v1858_v22, %v291_v46  ;;  %v293_v34 = vmul.f32 %v1580_v60, %v1839_v36  ;;  %1352 = vmatpush1.bf16.msra.mxu1 %v1351_v10  ;;  %v2080_v60 = vpop.permute.xlu0 %655  ;;  %v2082_v36 = vpop.permute.xlu1 %660 }
  0xf5   :  { %v1321_v26 = vpack.c.bf16 %v644_v30, %v636_v0  ;;  %v646_v45 = vmax.f32 %v518_v55, 0.0  ;;  %v509_v59 = vadd.f32 %v1860_v23, %v285_v43  ;;  %v635_v33 = vmax.f32 %v507_v58, 0.0 }
  0xf6   :  { %v643_v52 = vmax.f32 %v515_v11, 0.0  ;;  %v517_v5 = vadd.f32 %v1858_v22, %v293_v34 }
  0xf7   :  { %1322 = vmatprep.subr.bf16.mxu0 %v1321_v26  ;;  %v1353_v9 = vpack.c.bf16 %v646_v45, %v638_v3  ;;  %v637_v25 = vmax.f32 %v509_v59, 0.0 }
  0xf8   :  { %v1323_v56 = vpack.c.bf16 %v643_v52, %v635_v33  ;;  %v645_v51 = vmax.f32 %v517_v5, 0.0  ;;  %v2086_v38 = vpop.permute.xlu0 %665  ;;  %v2091_v17 = vpop.permute.xlu1 %1029 }
  0xf9   :  { %1354 = vmatprep.subr.bf16.mxu1 %v1353_v9 }
  0xfa   :  { %1324 = vmatpush1.bf16.msra.mxu0 %v1323_v56  ;;  %v1355_v2 = vpack.c.bf16 %v645_v51, %v637_v25 }
  0xfc   :  { %1356 = vmatpush1.bf16.msra.mxu1 %v1355_v2  ;;  %v2097_v8 = vpop.permute.xlu0 %1034  ;;  %v2110_v55 = vpop.permute.xlu1 %1039 }
  0xfd   :  { %899 = vmatmul.mubr.f32.vlgmr.msra.gmra.mrb[6].mxu0 %v1889_v42 }
  0xfe   :  { %904 = vmatprep.mubr.f32.mxu0 %v2201_v7 }
  0xff   :  { %982 = vmatmul.mubr.f32.vlgmr.msra.gmra.mrb[6].mxu1 %v1889_v42 }
 0x100   :  { %987 = vmatprep.mubr.f32.mxu1 %v2201_v7 }
 0x101   :  { %905 = vmatmul.mubr.f32.gmra.mrb[8].mxu0 %v1911_v61 }
 0x102   :  { %910 = vmatprep.mubr.f32.mxu0 %v2201_v7 }
 0x103   :  { %988 = vmatmul.mubr.f32.gmra.mrb[8].mxu1 %v1911_v61 }
 0x104   :  { %993 = vmatprep.mubr.f32.mxu1 %v2201_v7 }
 0x105   :  { %911 = vmatmul.mubr.f32.gmra.mrb[10].mxu0 %v1936_v14 }
 0x107   :  { %994 = vmatmul.mubr.f32.gmra.mrb[10].mxu1 %v1936_v14 }
 0x19e   :  { %v734_v22 = vpop.f32.mrb[0].mxu0  ;;  %v817_v23 = vpop.f32.mrb[0].mxu1 }
 0x19f   :  { %v735_v42 = vadd.f32 %v734_v22, %v2080_v60  ;;  %v818_v27 = vadd.f32 %v817_v23, %v2080_v60  ;;  %v736_v28 = vpop.f32.mrb[1].mxu0  ;;  %v819_v32 = vpop.f32.mrb[1].mxu1 }
 0x1a0   :  { %v737_v61 = vadd.f32 %v736_v28, %v2080_v60  ;;  %v820_v7 = vadd.f32 %v819_v32, %v2080_v60 }
 0x1a1   :  { %v1000_v37 = vmax.f32 %v735_v42, 0.0  ;;  %v1002_v14 = vmax.f32 %v818_v27, 0.0 }
 0x1a2   :  { %v1001_v44 = vmax.f32 %v737_v61, 0.0  ;;  %v740_v47 = vpop.f32.mrb[2].mxu0  ;;  %v1003_v62 = vmax.f32 %v820_v7, 0.0 }
 0x1a3   :  { %v741_v50 = vadd.f32 %v740_v47, %v2082_v36  ;;  %v823_v49 = vpop.f32.mrb[2].mxu1  ;;  %v742_v39 = vpop.f32.mrb[3].mxu0  ;;  %v1042_v1 = vmul.f32 %v2091_v17, %v1000_v37  ;;  %v1044_v31 = vmul.f32 %v2091_v17, %v1002_v14  ;;  %v1389_v14 = vmov 1966171168  }
 0x1a4   :  { %v824_v29 = vadd.f32 %v823_v49, %v2082_v36  ;;  %v743_v63 = vadd.f32 %v742_v39, %v2082_v36  ;;  %v825_v40 = vpop.f32.mrb[3].mxu1  ;;  %v1043_v12 = vmul.f32 %v2091_v17, %v1001_v44  ;;  %v1045_v20 = vmul.f32 %v2091_v17, %v1003_v62 }
 0x1a5   :  { %v1008_v48 = vmax.f32 %v741_v50, 0.0  ;;  %v826_v41 = vadd.f32 %v825_v40, %v2082_v36  ;;  %v1165_v44 = vunpack.c.l.s4 %v1389_v14  ;;  %v1138_v50 = vpop.permute.xlu0 %1137 }
 0x1a6   :  { %v1010_v19 = vmax.f32 %v824_v29, 0.0  ;;  %v1009_v13 = vmax.f32 %v743_v63, 0.0  ;;  %v746_v16 = vpop.f32.mrb[4].mxu0 }
 0x1a7   :  { %v1050_v21 = vmul.f32 %v2097_v8, %v1008_v48  ;;  %v1011_v35 = vmax.f32 %v826_v41, 0.0  ;;  %v747_v15 = vadd.f32 %v746_v16, %v2086_v38  ;;  %v829_v54 = vpop.f32.mrb[4].mxu1  ;;  %v748_v24 = vpop.f32.mrb[5].mxu0  ;;  %v1166_v48 = vunpack.c.0.s8 %v1165_v44  ;;  %v2202_v41 = vld [vmem:[#allocation6_spill] sm:$0xff] }
 0x1a8   :  { %v1052_v6 = vmul.f32 %v2097_v8, %v1010_v19  ;;  %v1051_v18 = vmul.f32 %v2097_v8, %v1009_v13  ;;  %v830_v53 = vadd.f32 %v829_v54, %v2086_v38  ;;  %v749_v0 = vadd.f32 %v748_v24, %v2086_v38  ;;  %v831_v4 = vpop.f32.mrb[5].mxu1 }
 0x1a9   :  { %v1066_v57 = vadd.f32 %v1050_v21, %v1042_v1  ;;  %v1053_v46 = vmul.f32 %v2097_v8, %v1011_v35  ;;  %v1016_v10 = vmax.f32 %v747_v15, 0.0  ;;  %v832_v30 = vadd.f32 %v831_v4, %v2086_v38 }
 0x1aa   :  { %v1082_v43 = vadd.f32 %v1052_v6, %v1044_v31  ;;  %v1074_v3 = vadd.f32 %v1051_v18, %v1043_v12  ;;  %v1018_v58 = vmax.f32 %v830_v53, 0.0  ;;  %v1017_v11 = vmax.f32 %v749_v0, 0.0 }
 0x1ab   :  { %v1090_v34 = vadd.f32 %v1053_v46, %v1045_v20  ;;  %v1058_v26 = vmul.f32 %v2110_v55, %v1016_v10  ;;  %v1019_v45 = vmax.f32 %v832_v30, 0.0  ;;  %v2203_v31 = vsub.s32 0, %v2202_v41 }
 0x1ac   :  { %v1060_v59 = vmul.f32 %v2110_v55, %v1018_v58  ;;  %v1059_v33 = vmul.f32 %v2110_v55, %v1017_v11  ;;  %v2124_v24 = vsub.s32 %v1166_v48, %v2202_v41 }
 0x1ad   :  { %v1067_v52 = vadd.f32 %v1066_v57, %v1058_v26  ;;  %v1061_v5 = vmul.f32 %v2110_v55, %v1019_v45  ;;  %v2118_v12 = vrot.slane %v1138_v50, %v2203_v31 }
 0x1ae   :  { %v1083_v9 = vadd.f32 %v1082_v43, %v1060_v59  ;;  %v1075_v25 = vadd.f32 %v1074_v3, %v1059_v33 }
 0x1af   :  { %v1068_v56 = vrot.slane %v1067_v52, 4  ;;  %v1091_v51 = vadd.f32 %v1090_v34, %v1061_v5 }
 0x1b0   :  { %v1084_v2 = vrot.slane %v1083_v9, 4  ;;  %v1076_v22 = vrot.slane %v1075_v25, 4 }
 0x1b1   :  { %v1069_v23 = vadd.f32 %v1068_v56, %v1067_v52  ;;  %v1092_v42 = vrot.slane %v1091_v51, 4 }
 0x1b2   :  { %v1085_v27 = vadd.f32 %v1084_v2, %v1083_v9  ;;  %v1077_v28 = vadd.f32 %v1076_v22, %v1075_v25 }
 0x1b3   :  { %v1070_v32 = vrot.slane %v1069_v23, 2  ;;  %v1093_v61 = vadd.f32 %v1092_v42, %v1091_v51 }
 0x1b4   :  { %v1086_v7 = vrot.slane %v1085_v27, 2  ;;  %v1078_v37 = vrot.slane %v1077_v28, 2 }
 0x1b5   :  { %v1071_v47 = vadd.f32 %v1070_v32, %v1069_v23  ;;  %v1094_v62 = vrot.slane %v1093_v61, 2 }
 0x1b6   :  { %v1087_v49 = vadd.f32 %v1086_v7, %v1085_v27  ;;  %v1079_v39 = vadd.f32 %v1078_v37, %v1077_v28 }
 0x1b7   :  { %v1072_v29 = vrot.slane %v1071_v47, 1  ;;  %v1095_v63 = vadd.f32 %v1094_v62, %v1093_v61 }
 0x1b8   :  { %v1088_v40 = vrot.slane %v1087_v49, 1  ;;  %v1080_v1 = vrot.slane %v1079_v39, 1 }
 0x1b9   :  { %v1073_v19 = vadd.f32 %v1072_v29, %v1071_v47  ;;  %v1096_v13 = vrot.slane %v1095_v63, 1 }
 0x1ba   :  { %v1089_v16 = vadd.f32 %v1088_v40, %v1087_v49  ;;  %v1081_v20 = vadd.f32 %v1080_v1, %v1079_v39 }
 0x1bb   :  { %v1144_v21 = vadd.f32 %v2118_v12, %v1073_v19  ;;  %v1097_v35 = vadd.f32 %v1096_v13, %v1095_v63 }
 0x1bc   :  { %v1146_v15 = vadd.f32 %v2118_v12, %v1089_v16  ;;  %v1145_v54 = vadd.f32 %v2118_v12, %v1081_v20 }
 0x1bd   :  { %v1147_v6 = vadd.f32 %v2118_v12, %v1097_v35 }
 0x1be   :  { %v1160_v18 = vcombine.low %v1144_v21, %v1145_v54 }
 0x1bf   :  { %v1161_v53 = vcombine.low %v1146_v15, %v1147_v6 }
 0x1c0   :  { %v2128_v0 = vrot.slane %v1160_v18, %v2124_v24 }
 0x1c1   :  { %v2131_v4 = vrot.slane %v1161_v53, %v2124_v24 }
 0x1c3   :  { %v1192_v57 = vcombine.low %v2128_v0, %v2131_v4 }
 0x1d0   :  { %v900_v46 = vpop.f32.mrb[6].mxu0 }
 0x1d1   :  { %v901_v10 = vadd.f32 %v900_v46, %v2080_v60  ;;  %v902_v30 = vpop.f32.mrb[7].mxu0 }
 0x1d2   :  { %v983_v43 = vpop.f32.mrb[6].mxu1  ;;  %v903_v3 = vadd.f32 %v902_v30, %v2080_v60 }
 0x1d3   :  { %v984_v58 = vadd.f32 %v983_v43, %v2080_v60  ;;  %v985_v11 = vpop.f32.mrb[7].mxu1  ;;  %v1004_v34 = vmax.f32 %v901_v10, 0.0 }
 0x1d4   :  { %v1005_v26 = vmax.f32 %v903_v3, 0.0  ;;  %v986_v45 = vadd.f32 %v985_v11, %v2080_v60  ;;  %v906_v59 = vpop.f32.mrb[8].mxu0 }
 0x1d5   :  { %v1006_v33 = vmax.f32 %v984_v58, 0.0  ;;  %v907_v52 = vadd.f32 %v906_v59, %v2082_v36  ;;  %v908_v5 = vpop.f32.mrb[9].mxu0  ;;  %v1046_v23 = vmul.f32 %v2091_v17, %v1004_v34 }
 0x1d6   :  { %v1007_v9 = vmax.f32 %v986_v45, 0.0  ;;  %v989_v25 = vpop.f32.mrb[8].mxu1  ;;  %v909_v56 = vadd.f32 %v908_v5, %v2082_v36  ;;  %v1047_v42 = vmul.f32 %v2091_v17, %v1005_v26 }
 0x1d7   :  { %v1012_v51 = vmax.f32 %v907_v52, 0.0  ;;  %v990_v2 = vadd.f32 %v989_v25, %v2082_v36  ;;  %v991_v22 = vpop.f32.mrb[9].mxu1  ;;  %v1048_v32 = vmul.f32 %v2091_v17, %v1006_v33 }
 0x1d8   :  { %v1013_v27 = vmax.f32 %v909_v56, 0.0  ;;  %v992_v60 = vadd.f32 %v991_v22, %v2082_v36  ;;  %v912_v28 = vpop.f32.mrb[10].mxu0  ;;  %v1049_v44 = vmul.f32 %v2091_v17, %v1007_v9 }
 0x1d9   :  { %v1054_v61 = vmul.f32 %v2097_v8, %v1012_v51  ;;  %v1014_v7 = vmax.f32 %v990_v2, 0.0  ;;  %v913_v37 = vadd.f32 %v912_v28, %v2086_v38  ;;  %v914_v14 = vpop.f32.mrb[11].mxu0 }
 0x1da   :  { %v1055_v47 = vmul.f32 %v2097_v8, %v1013_v27  ;;  %v1015_v62 = vmax.f32 %v992_v60, 0.0  ;;  %v995_v50 = vpop.f32.mrb[10].mxu1  ;;  %v915_v49 = vadd.f32 %v914_v14, %v2086_v38  ;;  %v1123_v16 = vsel %vm1122_vm0, %v1049_v44, 0.0 }
 0x1db   :  { %v1098_v39 = vadd.f32 %v1054_v61, %v1046_v23  ;;  %v1056_v36 = vmul.f32 %v2097_v8, %v1014_v7  ;;  %v1020_v29 = vmax.f32 %v913_v37, 0.0  ;;  %v996_v63 = vadd.f32 %v995_v50, %v2086_v38  ;;  %v997_v40 = vpop.f32.mrb[11].mxu1 }
 0x1dc   :  { %v1106_v1 = vadd.f32 %v1055_v47, %v1047_v42  ;;  %v1057_v48 = vmul.f32 %v2097_v8, %v1015_v62  ;;  %v1021_v41 = vmax.f32 %v915_v49, 0.0  ;;  %v998_v31 = vadd.f32 %v997_v40, %v2086_v38 }
 0x1dd   :  { %v1114_v17 = vadd.f32 %v1056_v36, %v1048_v32  ;;  %v1062_v19 = vmul.f32 %v2110_v55, %v1020_v29  ;;  %v1022_v13 = vmax.f32 %v996_v63, 0.0  ;;  %v1200_v50 = vrot.slane %v1192_v57, %v2124_v24 }
 0x1de   :  { %v1124_v20 = vsel %vm1122_vm0, %v1057_v48, 0.0  ;;  %v1063_v21 = vmul.f32 %v2110_v55, %v1021_v41  ;;  %v1023_v35 = vmax.f32 %v998_v31, 0.0 }
 0x1df   :  { %v1125_v15 = vadd.f32 %v1124_v20, %v1123_v16  ;;  %v1099_v54 = vadd.f32 %v1098_v39, %v1062_v19  ;;  %v1064_v6 = vmul.f32 %v2110_v55, %v1022_v13  ;;  %v2204_v39 = vlaneseq }
 0x1e0   :  { %v1107_v18 = vadd.f32 %v1106_v1, %v1063_v21  ;;  %v1065_v8 = vmul.f32 %v2110_v55, %v1023_v35 }
 0x1e1   :  { %v1100_v53 = vrot.slane %v1099_v54, 4  ;;  %v1115_v38 = vadd.f32 %v1114_v17, %v1064_v6  ;;  %vm1212_vm1 = vcmp.lt.s32.totalorder %v2204_v39, 1000 }
 0x1e2   :  { %v1108_v46 = vrot.slane %v1107_v18, 4  ;;  %v1126_v10 = vsel %vm1122_vm0, %v1065_v8, 0.0 }
 0x1e3   :  { %v1101_v30 = vadd.f32 %v1100_v53, %v1099_v54  ;;  %v1116_v43 = vrot.slane %v1115_v38, 4  ;;  %v1127_v3 = vadd.f32 %v1126_v10, %v1125_v15 }
 0x1e4   :  { %v1109_v58 = vadd.f32 %v1108_v46, %v1107_v18 }
 0x1e5   :  { %v1102_v11 = vrot.slane %v1101_v30, 2  ;;  %v1117_v34 = vadd.f32 %v1116_v43, %v1115_v38  ;;  %v1128_v26 = vrot.slane %v1127_v3, 4 }
 0x1e6   :  { %v1110_v45 = vrot.slane %v1109_v58, 2 }
 0x1e7   :  { %v1103_v59 = vadd.f32 %v1102_v11, %v1101_v30  ;;  %v1118_v33 = vrot.slane %v1117_v34, 2  ;;  %v1129_v52 = vadd.f32 %v1128_v26, %v1127_v3 }
 0x1e8   :  { %v1111_v5 = vadd.f32 %v1110_v45, %v1109_v58 }
 0x1e9   :  { %v1104_v9 = vrot.slane %v1103_v59, 1  ;;  %v1119_v25 = vadd.f32 %v1118_v33, %v1117_v34  ;;  %v1130_v55 = vrot.slane %v1129_v52, 2 }
 0x1ea   :  { %v1112_v56 = vrot.slane %v1111_v5, 1 }
 0x1eb   :  { %v1105_v51 = vadd.f32 %v1104_v9, %v1103_v59  ;;  %v1120_v2 = vrot.slane %v1119_v25, 1  ;;  %v1131_v22 = vadd.f32 %v1130_v55, %v1129_v52 }
 0x1ec   :  { %v1113_v23 = vadd.f32 %v1112_v56, %v1111_v5 }
 0x1ed   :  { %v1148_v42 = vadd.f32 %v2118_v12, %v1105_v51  ;;  %v1121_v27 = vadd.f32 %v1120_v2, %v1119_v25  ;;  %v1132_v60 = vrot.slane %v1131_v22, 1 }
 0x1ee   :  { %v1149_v28 = vadd.f32 %v2118_v12, %v1113_v23 }
 0x1ef   :  { %v1133_v32 = vadd.f32 %v1132_v60, %v1131_v22  ;;  %v1150_v7 = vadd.f32 %v2118_v12, %v1121_v27 }
 0x1f0   :  { %v1162_v61 = vcombine.low %v1148_v42, %v1149_v28 }
 0x1f1   :  { %v1151_v37 = vadd.f32 %v2118_v12, %v1133_v32 }
 0x1f2   :  { %v1184_v44 = vrot.slane %v1162_v61, %v2124_v24 }
 0x1f3   :  { %v1163_v14 = vcombine.low %v1150_v7, %v1151_v37 }
 0x1f5   :  { %v1191_v47 = vrot.slane %v1163_v14, %v2124_v24 }
 0x1f7   :  { %v1193_v62 = vcombine.low %v1184_v44, %v1191_v47 }
 0x1f9   :  { %v1207_v49 = vrot.slane %v1193_v62, %v2124_v24 }
 0x1fb   :  { %v1208_v36 = vcombine.low %v1200_v50, %v1207_v49 }
 0x1fd   :  { %1214 = vst.msk [vmem:[#allocation3] sm:$0xff] %vm1212_vm1, %v1208_v36 }
 0x1fe   :  { %1374 = shalt.err (!%p1371_p4)
}
 0x1ff   :  { %s1375_s13 = scalar_lea.hbm %s2193_s7, 128 }
 0x200   :  { %p1376_p5 = scmp.ne.s32.totalorder %s2193_s7, %s1375_s13  ;;  %p1379_p6 = scmp.lt.u32.totalorder %s1375_s13, %s2193_s7 }
 0x202   :  { %p1381_p7 = pnand %p1379_p6, %p1376_p5 }
 0x204   :  { %1384 = shalt.err (!%p1381_p7)
}
 0x205   :  { %1224 = dma.vmem_to_hbm [thread:$0]  %s1222_s6, 128, %s2193_s7, [#allocation4]  }
 0x206   :  { %1385 = dma.done.wait [#allocation4], 128  }
 0x207   :  { %1386 = vsyncadd [#allocation4], 4294967168 }
 0x208   :  { %1228 = vsyncpa [#allocation4], 1 }

</bundles_post_ra>
